<compile_context>
chip_gen: v7x
topology: tpu7x:2x2x1
jax: 0.10.0
libtpu: 0.0.40
codegen_flags: <defaults>
</compile_context>

<pallas_src>
import bisect
import functools

import numpy as np
import jax
import jax.numpy as jnp
from jax.experimental import pallas as pl
from jax.experimental.pallas import tpu as pltpu

D = 32          # hidden size
S = 8           # sequence length
V = 64          # vocab size
ROW_BLOCK = 8   # sublane-aligned row block for the encode kernels
NSP_PAD = 128   # NSP head padded to a full lane width (lane-dense store)

_VMEM = pl.BlockSpec(memory_space=pltpu.MemorySpace.VMEM)
_EPS2 = 1e-16   # (torch cosine eps 1e-8)^2


# --------------------------- in-kernel helpers ---------------------------

def _weighted_onehot_counts(ids, weights, vocab):
    """counts[n, v] = sum_s weights[n, s] * (ids[n, s] == v); ids/weights are (R, S)."""
    r = ids.shape[0]
    iota_v = jax.lax.broadcasted_iota(jnp.int32, (r, vocab), 1)
    counts = jnp.zeros((r, vocab), jnp.float32)
    for s in range(ids.shape[1]):                      # S is small & static -> unrolled
        hit = (ids[:, s:s + 1] == iota_v).astype(jnp.float32)
        counts = counts + hit * weights[:, s:s + 1]
    return counts


def _rsqrt_clamped(sq):
    return jax.lax.rsqrt(jnp.maximum(sq, _EPS2))


# --------------------------- Pallas kernels ---------------------------

def _topic_encode_kernel(ids_ref, mask_ref, emb_ref, w_ref, b_ref, out_ref):
    """pooled = tanh(((sum_s emb[ids]*mask) / sum_s mask) @ W + b), gather fused."""
    ids = ids_ref[...]
    mask = mask_ref[...].astype(jnp.float32)
    counts = _weighted_onehot_counts(ids, mask, emb_ref.shape[0])          # (R, V)
    cnt = jnp.maximum(jnp.sum(mask, axis=1, keepdims=True), 1.0)           # (R, 1)
    mean = jnp.dot(counts, emb_ref[...],
                   preferred_element_type=jnp.float32) / cnt               # (R, D)
    out_ref[...] = jnp.tanh(
        jnp.dot(mean, w_ref[...], preferred_element_type=jnp.float32) + b_ref[...])


def _coheren_encode_kernel(ids_ref, type_ref, mask_ref, emb_ref, temb_ref,
                           w_ref, b_ref, nw_ref, nb_ref, logits_ref, pooled_ref):
    """Fused gather(+type emb) + masked-mean + tanh pooler + NSP linear."""
    ids = ids_ref[...]
    tids = type_ref[...]
    mask = mask_ref[...].astype(jnp.float32)
    counts_v = _weighted_onehot_counts(ids, mask, emb_ref.shape[0])        # (R, V)
    counts_t = _weighted_onehot_counts(tids, mask, temb_ref.shape[0])      # (R, 2)
    cnt = jnp.maximum(jnp.sum(mask, axis=1, keepdims=True), 1.0)
    summed = (jnp.dot(counts_v, emb_ref[...], preferred_element_type=jnp.float32)
              + jnp.dot(counts_t, temb_ref[...], preferred_element_type=jnp.float32))
    pooled = jnp.tanh(
        jnp.dot(summed / cnt, w_ref[...], preferred_element_type=jnp.float32)
        + b_ref[...])
    pooled_ref[...] = pooled
    logits_ref[...] = jnp.dot(pooled, nw_ref[...],
                              preferred_element_type=jnp.float32) + nb_ref[...]


def _window_cosine_sigmoid_kernel(a_con_ref, a_cur_ref, topic_ref, out_ref):
    """sigmoid(cos(A_con @ topic, A_cur @ topic)) for all dialog windows at once."""
    topic = topic_ref[...]
    cons = jnp.dot(a_con_ref[...], topic, preferred_element_type=jnp.float32)
    curs = jnp.dot(a_cur_ref[...], topic, preferred_element_type=jnp.float32)
    dot = jnp.sum(cons * curs, axis=-1, keepdims=True)
    cos = (dot * _rsqrt_clamped(jnp.sum(cons * cons, axis=-1, keepdims=True))
               * _rsqrt_clamped(jnp.sum(curs * curs, axis=-1, keepdims=True)))
    out_ref[...] = jnp.broadcast_to(jax.nn.sigmoid(cos), out_ref.shape)


def _dialog_margin_loss_kernel(pos_sel_ref, neg_sel_ref, anc_sel_ref,
                               pos_msk_ref, neg_msk_ref, topic_ref, out_ref,
                               *, margin):
    """Per-dialog mean(clamp(margin - (cos(a,pos_p) - cos(a,neg_q)), 0)) over all pairs."""
    pos_sel = pos_sel_ref[0]          # (P, T)
    neg_sel = neg_sel_ref[0]          # (Q, T)
    anc_sel = anc_sel_ref[0]          # (1, T)
    pos_msk = pos_msk_ref[0]          # (P, 1)
    neg_msk = neg_msk_ref[0]          # (1, Q)
    topic = topic_ref[...]            # (T, D)

    anchor = jnp.dot(anc_sel, topic, preferred_element_type=jnp.float32)   # (1, D)
    pos = jnp.dot(pos_sel, topic, preferred_element_type=jnp.float32)      # (P, D)
    neg = jnp.dot(neg_sel, topic, preferred_element_type=jnp.float32)      # (Q, D)

    a_inv = _rsqrt_clamped(jnp.sum(anchor * anchor, axis=-1, keepdims=True))  # (1, 1)

    # pos scores, sublane-major (P, 1)
    p_dot = jnp.sum(pos * anchor, axis=-1, keepdims=True)
    p_score = p_dot * _rsqrt_clamped(jnp.sum(pos * pos, axis=-1, keepdims=True)) * a_inv

    # neg scores, lane-major (1, Q) via contraction over D (q @ k^T pattern)
    dn = (((1,), (1,)), ((), ()))
    n_dot = jax.lax.dot_general(anchor, neg, dn, preferred_element_type=jnp.float32)
    n_nrm2 = jax.lax.dot_general(jnp.ones_like(anchor), neg * neg, dn,
                                 preferred_element_type=jnp.float32)
    n_score = n_dot * _rsqrt_clamped(n_nrm2) * a_inv                       # (1, Q)

    pair = jnp.maximum(margin - (p_score - n_score), 0.0)                  # (P, Q)
    w = pos_msk * neg_msk                                                  # (P, Q)
    total = jnp.sum(jnp.sum(pair * w, axis=1, keepdims=True), axis=0, keepdims=True)
    cnt = jnp.sum(jnp.sum(w, axis=1, keepdims=True), axis=0, keepdims=True)
    loss = total / jnp.maximum(cnt, 1.0)                                   # (1, 1)
    out_ref[0] = jnp.broadcast_to(loss, (1, out_ref.shape[-1]))


def _final_margin_loss_kernel(ctx_sel_ref, pos_sel_ref, neg_sel_ref,
                              ctx_ref, pos_ref, neg_ref,
                              coh_pos_ref, coh_neg_ref, out_ref, *, margin):
    """Fused per-batch means + cosine scores + coherence logit add + margin loss."""
    ctx_m = jnp.dot(ctx_sel_ref[...], ctx_ref[...], preferred_element_type=jnp.float32)
    pos_m = jnp.dot(pos_sel_ref[...], pos_ref[...], preferred_element_type=jnp.float32)
    neg_m = jnp.dot(neg_sel_ref[...], neg_ref[...], preferred_element_type=jnp.float32)
    c_inv = _rsqrt_clamped(jnp.sum(ctx_m * ctx_m, axis=-1, keepdims=True))
    p_inv = _rsqrt_clamped(jnp.sum(pos_m * pos_m, axis=-1, keepdims=True))
    n_inv = _rsqrt_clamped(jnp.sum(neg_m * neg_m, axis=-1, keepdims=True))
    pos_cos = jnp.sum(ctx_m * pos_m, axis=-1, keepdims=True) * c_inv * p_inv
    neg_cos = jnp.sum(ctx_m * neg_m, axis=-1, keepdims=True) * c_inv * n_inv
    p_scores = coh_pos_ref[...] + pos_cos                                  # (B, 1)
    n_scores = coh_neg_ref[...] + neg_cos                                  # (B, 1)
    clamped = jnp.maximum(margin - (p_scores - n_scores), 0.0)
    loss = jnp.sum(clamped, axis=0, keepdims=True) / float(clamped.shape[0])
    out_ref[...] = jnp.broadcast_to(loss, out_ref.shape)


# --------------------------- wrappers ---------------------------

def _pad_rows(x, mult):
    pad = (-x.shape[0]) % mult
    if pad:
        x = jnp.pad(x, ((0, pad),) + ((0, 0),) * (x.ndim - 1))
    return x


def topic_encode(params, ids, mask):
    """topic_model(ids, mask)[1] -> pooled (N, D); gather + pool fused, grid over rows."""
    n = ids.shape[0]
    ids_p = _pad_rows(ids, ROW_BLOCK)
    mask_p = _pad_rows(mask, ROW_BLOCK)
    n_pad = ids_p.shape[0]
    out = pl.pallas_call(
        _topic_encode_kernel,
        out_shape=jax.ShapeDtypeStruct((n_pad, D), jnp.float32),
        grid=(n_pad // ROW_BLOCK,),
        in_specs=[
            pl.BlockSpec((ROW_BLOCK, S), lambda i: (i, 0)),
            pl.BlockSpec((ROW_BLOCK, S), lambda i: (i, 0)),
            pl.BlockSpec((V, D), lambda i: (0, 0)),
            pl.BlockSpec((D, D), lambda i: (0, 0)),
            pl.BlockSpec((1, D), lambda i: (0, 0)),
        ],
        out_specs=pl.BlockSpec((ROW_BLOCK, D), lambda i: (i, 0)),
        compiler_params=pltpu.CompilerParams(dimension_semantics=("parallel",)),
    )(ids_p, mask_p, params["topic_emb"], params["topic_pool_w"],
      params["topic_pool_b"].reshape(1, -1))
    return out[:n]


def coheren_encode(params, ids, mask, type_ids):
    """coheren_model(...) -> (nsp_logits (N,2), pooled (N,D)); fully fused."""
    n = ids.shape[0]
    ids_p = _pad_rows(ids, ROW_BLOCK)
    mask_p = _pad_rows(mask, ROW_BLOCK)
    type_p = _pad_rows(type_ids, ROW_BLOCK)
    n_pad = ids_p.shape[0]
    n_type = params["coh_type_emb"].shape[0]
    n_cls = params["nsp_w"].shape[1]
    nsp_w = jnp.pad(params["nsp_w"], ((0, 0), (0, NSP_PAD - n_cls)))
    nsp_b = jnp.pad(params["nsp_b"].reshape(1, -1), ((0, 0), (0, NSP_PAD - n_cls)))
    logits, pooled = pl.pallas_call(
        _coheren_encode_kernel,
        out_shape=(jax.ShapeDtypeStruct((n_pad, NSP_PAD), jnp.float32),
                   jax.ShapeDtypeStruct((n_pad, D), jnp.float32)),
        grid=(n_pad // ROW_BLOCK,),
        in_specs=[
            pl.BlockSpec((ROW_BLOCK, S), lambda i: (i, 0)),
            pl.BlockSpec((ROW_BLOCK, S), lambda i: (i, 0)),
            pl.BlockSpec((ROW_BLOCK, S), lambda i: (i, 0)),
            pl.BlockSpec((V, D), lambda i: (0, 0)),
            pl.BlockSpec((n_type, D), lambda i: (0, 0)),
            pl.BlockSpec((D, D), lambda i: (0, 0)),
            pl.BlockSpec((1, D), lambda i: (0, 0)),
            pl.BlockSpec((D, NSP_PAD), lambda i: (0, 0)),
            pl.BlockSpec((1, NSP_PAD), lambda i: (0, 0)),
        ],
        out_specs=[pl.BlockSpec((ROW_BLOCK, NSP_PAD), lambda i: (i, 0)),
                   pl.BlockSpec((ROW_BLOCK, D), lambda i: (i, 0))],
        compiler_params=pltpu.CompilerParams(dimension_semantics=("parallel",)),
    )(ids_p, type_p, mask_p, params["coh_emb"], params["coh_type_emb"],
      params["coh_pool_w"], params["coh_pool_b"].reshape(1, -1), nsp_w, nsp_b)
    return logits[:n, :n_cls], pooled[:n]


def window_cosine_sigmoid(a_con, a_cur, topic_all):
    m_pad = a_con.shape[0]
    return pl.pallas_call(
        _window_cosine_sigmoid_kernel,
        out_shape=jax.ShapeDtypeStruct((m_pad, 128), jnp.float32),
        in_specs=[_VMEM, _VMEM, _VMEM],
        out_specs=_VMEM,
    )(a_con, a_cur, topic_all)


def dialog_margin_loss(pos_sel, neg_sel, anc_sel, pos_msk, neg_msk, topic_all, margin):
    b, p_max, t = pos_sel.shape
    q_max = neg_sel.shape[1]
    d = topic_all.shape[1]
    out = pl.pallas_call(
        functools.partial(_dialog_margin_loss_kernel, margin=float(margin)),
        out_shape=jax.ShapeDtypeStruct((b, 1, 128), jnp.float32),
        grid=(b,),
        in_specs=[
            pl.BlockSpec((1, p_max, t), lambda i: (i, 0, 0)),
            pl.BlockSpec((1, q_max, t), lambda i: (i, 0, 0)),
            pl.BlockSpec((1, 1, t), lambda i: (i, 0, 0)),
            pl.BlockSpec((1, p_max, 1), lambda i: (i, 0, 0)),
            pl.BlockSpec((1, 1, q_max), lambda i: (i, 0, 0)),
            pl.BlockSpec((t, d), lambda i: (0, 0)),
        ],
        out_specs=pl.BlockSpec((1, 1, 128), lambda i: (i, 0, 0)),
        compiler_params=pltpu.CompilerParams(dimension_semantics=("parallel",)),
    )(pos_sel, neg_sel, anc_sel, pos_msk, neg_msk, topic_all)
    return out[:, 0, 0]                                                    # (B,)


def final_margin_loss(ctx_sel, pos_sel, neg_sel, ctx, pos, neg,
                      coh_pos_col, coh_neg_col, margin):
    out = pl.pallas_call(
        functools.partial(_final_margin_loss_kernel, margin=float(margin)),
        out_shape=jax.ShapeDtypeStruct((1, 128), jnp.float32),
        in_specs=[_VMEM] * 8,
        out_specs=_VMEM,
    )(ctx_sel, pos_sel, neg_sel, ctx, pos, neg, coh_pos_col, coh_neg_col)
    return out[0, 0]


# --------------------------- synthetic encoder params ---------------------------

def init_params(key):
    ks = jax.random.split(key, 6)
    f = lambda k, shape: (0.02 * jax.random.normal(k, shape)).astype(jnp.float32)
    return {
        "topic_emb": f(ks[0], (V, D)),
        "topic_pool_w": f(ks[1], (D, D)),
        "topic_pool_b": jnp.zeros((D,), jnp.float32),
        "coh_emb": f(ks[2], (V, D)),
        "coh_type_emb": f(ks[3], (2, D)),
        "coh_pool_w": f(ks[4], (D, D)),
        "coh_pool_b": jnp.zeros((D,), jnp.float32),
        "nsp_w": f(ks[5], (D, 2)),
        "nsp_b": jnp.zeros((2,), jnp.float32),
    }


# --------------------------- tet (host-side, same as reference) ---------------------------

def tet(scores):
    out = []
    n = len(scores)
    for i in range(n):
        lflag, rflag = scores[i], scores[i]
        if i == 0:
            for r in range(i + 1, n):
                if rflag <= scores[r]:
                    rflag = scores[r]
                else:
                    break
        elif i == n - 1:
            for l in range(i - 1, -1, -1):
                if lflag <= scores[l]:
                    lflag = scores[l]
                else:
                    break
        else:
            for r in range(i + 1, n):
                if rflag <= scores[r]:
                    rflag = scores[r]
                else:
                    break
            for l in range(i - 1, -1, -1):
                if lflag <= scores[l]:
                    lflag = scores[l]
                else:
                    break
        out.append(0.5 * (lflag + rflag - 2 * scores[i]))
    return out


# --------------------------- host-side selection-matrix helpers ---------------------------

def _group_mean_matrix(counts, total_rows):
    mat = np.zeros((len(counts), total_rows), np.float32)
    off = 0
    for b, c in enumerate(counts):
        mat[b, off:off + c] = 1.0 / float(c)
        off += c
    assert off == total_rows
    return jnp.asarray(mat)


# --------------------------- SegModel.topic_train ---------------------------

def topic_train(input_data, topic_all, window_size, margin, train_split):
    batch_size = len(input_data["topic_context_num"])
    topic_num = input_data["topic_num"]
    t_total = topic_all.shape[0]

    # ---- stage 1: windowed means + cosine + sigmoid for ALL dialogs (one kernel) ----
    m_total = sum(int(n[0]) - 1 for n in topic_num)
    m_pad = max(ROW_BLOCK, -(-m_total // ROW_BLOCK) * ROW_BLOCK)
    a_con = np.zeros((m_pad, t_total), np.float32)
    a_cur = np.zeros((m_pad, t_total), np.float32)
    m = 0
    count = 0
    for b in range(batch_size):
        dial_len, cur_utt = topic_num[b]
        assert dial_len > cur_utt
        for i in range(1, dial_len):
            lo = max(0, i - 2)
            a_con[m, count + lo:count + i] = 1.0 / (i - lo)
            hi = min(dial_len, i + 2)
            a_cur[m, count + i:count + hi] = 1.0 / (hi - i)
            m += 1
        count += dial_len

    sig = window_cosine_sigmoid(jnp.asarray(a_con), jnp.asarray(a_cur), topic_all)
    sig_host = np.asarray(jax.device_get(sig))[:, 0]        # single host transfer

    # ---- stage 2: host-side tet / argsort / bisect segmentation ----
    seg_info = []
    m = 0
    count = 0
    for b in range(batch_size):
        dial_len, cur_utt = topic_num[b]
        depth_scores = tet([float(v) for v in sig_host[m:m + dial_len - 1]])
        tet_seg = np.argsort(np.array(depth_scores))[-train_split:] + 1
        tet_seg = [0] + tet_seg.tolist() + [dial_len]
        tet_seg.sort()
        tet_mid = bisect.bisect(tet_seg, cur_utt)
        tet_mid_seg = (tet_seg[tet_mid - 1], tet_seg[tet_mid])
        pos_left = max(tet_mid_seg[0], cur_utt - window_size)
        pos_right = min(tet_mid_seg[1], cur_utt + window_size + 1)
        neg_left = min(tet_seg[max(0, tet_mid - 1)], cur_utt - window_size)
        neg_right = max(tet_seg[tet_mid], cur_utt + window_size + 1)
        seg_info.append((pos_left, pos_right, neg_left, neg_right, count, cur_utt))
        m += dial_len - 1
        count += dial_len

    # ---- stage 3: batched per-dialog margin loss (one kernel, grid over dialogs) ----
    rows = np.arange(t_total)
    pos_lists, neg_lists, anchors = [], [], []
    for (pos_left, pos_right, neg_left, neg_right, count, cur_utt) in seg_info:
        pos_idx = np.concatenate([rows[count + pos_left:count + cur_utt],
                                  rows[count + cur_utt + 1:count + pos_right]])
        # NOTE: count+neg_left may be negative; Python slice semantics mirror the reference.
        neg_idx = np.concatenate([rows[:count + neg_left], rows[count + neg_right:]])
        pos_lists.append(pos_idx)
        neg_lists.append(neg_idx)
        anchors.append(count + cur_utt)

    p_max = max(1, max(len(p) for p in pos_lists))
    q_max = max(1, max(len(q) for q in neg_lists))
    pos_sel = np.zeros((batch_size, p_max, t_total), np.float32)
    neg_sel = np.zeros((batch_size, q_max, t_total), np.float32)
    anc_sel = np.zeros((batch_size, 1, t_total), np.float32)
    pos_msk = np.zeros((batch_size, p_max, 1), np.float32)
    neg_msk = np.zeros((batch_size, 1, q_max), np.float32)
    nonempty = np.zeros((batch_size,), np.float32)
    for b in range(batch_size):
        for r, idx in enumerate(pos_lists[b]):
            pos_sel[b, r, idx] = 1.0
            pos_msk[b, r, 0] = 1.0
        for r, idx in enumerate(neg_lists[b]):
            neg_sel[b, r, idx] = 1.0
            neg_msk[b, 0, r] = 1.0
        anc_sel[b, 0, anchors[b]] = 1.0
        nonempty[b] = 1.0 if (len(pos_lists[b]) > 0 and len(neg_lists[b]) > 0) else 0.0

    per_dialog = dialog_margin_loss(
        jnp.asarray(pos_sel), jnp.asarray(neg_sel), jnp.asarray(anc_sel),
        jnp.asarray(pos_msk), jnp.asarray(neg_msk), topic_all, margin)     # (B,)

    # device-side replacement of the per-dialog bool(isnan) host sync
    nonempty_j = jnp.asarray(nonempty)
    nan_mask = jnp.isnan(per_dialog)
    valid = nonempty_j * (1.0 - nan_mask.astype(jnp.float32))
    margin_count = jnp.sum(valid)
    topic_loss = jnp.sum(jnp.where(nan_mask, 0.0, per_dialog) * nonempty_j) / margin_count
    return topic_loss


# --------------------------- SegModel.forward ---------------------------

def seg_model_forward(params, input_data, window_size, margin=1.0, train_split=2):
    # coherence encoder: pos and neg stacked -> one fused kernel call
    coh_ids = jnp.concatenate([input_data["coheren_inputs"][:, 0, :],
                               input_data["coheren_inputs"][:, 1, :]], axis=0)
    coh_mask = jnp.concatenate([input_data["coheren_mask"][:, 0, :],
                                input_data["coheren_mask"][:, 1, :]], axis=0)
    coh_type = jnp.concatenate([input_data["coheren_type"][:, 0, :],
                                input_data["coheren_type"][:, 1, :]], axis=0)
    coh_logits, _coh_pooled = coheren_encode(params, coh_ids, coh_mask, coh_type)
    bsz = input_data["coheren_inputs"].shape[0]
    coh_pos_col = coh_logits[:bsz, 0:1]
    coh_neg_col = coh_logits[bsz:, 0:1]

    batch_size = len(input_data["topic_context_num"])

    # topic encoder: context + pos + neg + train in ONE fused call
    n_ctx = input_data["topic_context"].shape[0]
    n_pos = input_data["topic_pos"].shape[0]
    n_neg = input_data["topic_neg"].shape[0]
    all_ids = jnp.concatenate([input_data["topic_context"], input_data["topic_pos"],
                               input_data["topic_neg"], input_data["topic_train"]], axis=0)
    all_mask = jnp.concatenate([input_data["topic_context_mask"],
                                input_data["topic_pos_mask"],
                                input_data["topic_neg_mask"],
                                input_data["topic_train_mask"]], axis=0)
    pooled_all = topic_encode(params, all_ids, all_mask)
    topic_context = pooled_all[:n_ctx]
    topic_pos = pooled_all[n_ctx:n_ctx + n_pos]
    topic_neg = pooled_all[n_ctx + n_pos:n_ctx + n_pos + n_neg]
    topic_all = pooled_all[n_ctx + n_pos + n_neg:]

    topic_loss = topic_train(input_data, topic_all, window_size, margin, train_split)

    # per-batch means (pad_sequence of equal-size vectors == stack) as selection matmuls
    ctx_sel = _group_mean_matrix(input_data["topic_context_num"], n_ctx)
    pos_sel = _group_mean_matrix(input_data["topic_pos_num"], n_pos)
    neg_sel = _group_mean_matrix(input_data["topic_neg_num"], n_neg)
    assert ctx_sel.shape[0] == pos_sel.shape[0] == neg_sel.shape[0] == batch_size

    margin_loss = final_margin_loss(ctx_sel, pos_sel, neg_sel,
                                    topic_context, topic_pos, topic_neg,
                                    coh_pos_col, coh_neg_col, margin)
    loss = margin_loss + topic_loss
    return loss, margin_loss, topic_loss


# --------------------------- example inputs ---------------------------

def make_inputs(key):
    ks = jax.random.split(key, 8)
    ri = lambda k, shape: jax.random.randint(k, shape, 0, V, dtype=jnp.int32)

    topic_context_num = [2, 3]
    topic_pos_num = [1, 2]
    topic_neg_num = [2, 1]
    topic_num = [[10, 5], [9, 4]]        # (dial_len, cur_utt) per dialog
    t_train = sum(n[0] for n in topic_num)

    coh_type = jnp.concatenate(
        [jnp.zeros((2, 2, S // 2), jnp.int32), jnp.ones((2, 2, S - S // 2), jnp.int32)],
        axis=-1)

    return {
        "coheren_inputs": ri(ks[0], (2, 2, S)),
        "coheren_mask": jnp.ones((2, 2, S), jnp.int32).at[:, :, -2:].set(0),
        "coheren_type": coh_type,
        "topic_context": ri(ks[1], (sum(topic_context_num), S)),
        "topic_context_mask": jnp.ones((sum(topic_context_num), S), jnp.int32),
        "topic_pos": ri(ks[2], (sum(topic_pos_num), S)),
        "topic_pos_mask": jnp.ones((sum(topic_pos_num), S), jnp.int32),
        "topic_neg": ri(ks[3], (sum(topic_neg_num), S)),
        "topic_neg_mask": jnp.ones((sum(topic_neg_num), S), jnp.int32),
        "topic_train": ri(ks[4], (t_train, S)),
        "topic_train_mask": jnp.ones((t_train, S), jnp.int32),
        "topic_context_num": topic_context_num,
        "topic_pos_num": topic_pos_num,
        "topic_neg_num": topic_neg_num,
        "topic_num": topic_num,
    }


if __name__ == "__main__":
    root = jax.random.PRNGKey(0)
    pkey, dkey = jax.random.split(root)
    params = init_params(pkey)
    input_data = make_inputs(dkey)

    loss, margin_loss, topic_loss = seg_model_forward(
        params, input_data, window_size=2, margin=1.0, train_split=2)
    jax.block_until_ready((loss, margin_loss, topic_loss))
    print("KERNEL_OK")
</pallas_src>

<mosaic_0001>
module attributes {stable_mosaic.version = 11 : i64} {
  func.func @_coheren_encode_kernel(%arg0: i32, %arg1: memref<8x8xi32, #tpu.memory_space<vmem>>, %arg2: memref<8x8xi32, #tpu.memory_space<vmem>>, %arg3: memref<8x8xi32, #tpu.memory_space<vmem>>, %arg4: memref<64x32xf32, #tpu.memory_space<vmem>>, %arg5: memref<2x32xf32, #tpu.memory_space<vmem>>, %arg6: memref<32x32xf32, #tpu.memory_space<vmem>>, %arg7: memref<1x32xf32, #tpu.memory_space<vmem>>, %arg8: memref<32x128xf32, #tpu.memory_space<vmem>>, %arg9: memref<1x128xf32, #tpu.memory_space<vmem>>, %arg10: memref<8x128xf32, #tpu.memory_space<vmem>>, %arg11: memref<8x32xf32, #tpu.memory_space<vmem>>) attributes {dimension_semantics = [#tpu.dimension_semantics<parallel>], iteration_bounds = array<i64: 1>, scalar_prefetch = 0 : i64, scratch_operands = 0 : i64, tpu.core_type = #tpu.core_type<tc>, window_params = [{transform_indices = @transform_0, window_bounds = array<i64: 8, 8>}, {transform_indices = @transform_1, window_bounds = array<i64: 8, 8>}, {transform_indices = @transform_2, window_bounds = array<i64: 8, 8>}, {pipeline_mode = #tpu.pipeline_mode<synchronous>, transform_indices = @transform_3, window_bounds = array<i64: 64, 32>}, {pipeline_mode = #tpu.pipeline_mode<synchronous>, transform_indices = @transform_4, window_bounds = array<i64: 2, 32>}, {pipeline_mode = #tpu.pipeline_mode<synchronous>, transform_indices = @transform_5, window_bounds = array<i64: 32, 32>}, {pipeline_mode = #tpu.pipeline_mode<synchronous>, transform_indices = @transform_6, window_bounds = array<i64: 1, 32>}, {pipeline_mode = #tpu.pipeline_mode<synchronous>, transform_indices = @transform_7, window_bounds = array<i64: 32, 128>}, {pipeline_mode = #tpu.pipeline_mode<synchronous>, transform_indices = @transform_8, window_bounds = array<i64: 1, 128>}, {transform_indices = @transform_9, window_bounds = array<i64: 8, 128>}, {transform_indices = @transform_10, window_bounds = array<i64: 8, 32>}]} {
    %c0 = arith.constant 0 : index
    %c0_0 = arith.constant 0 : index
    %0 = vector.load %arg1[%c0, %c0_0] : memref<8x8xi32, #tpu.memory_space<vmem>>, vector<8x8xi32>
    %c0_1 = arith.constant 0 : index
    %c0_2 = arith.constant 0 : index
    %1 = vector.load %arg2[%c0_1, %c0_2] : memref<8x8xi32, #tpu.memory_space<vmem>>, vector<8x8xi32>
    %c0_3 = arith.constant 0 : index
    %c0_4 = arith.constant 0 : index
    %2 = vector.load %arg3[%c0_3, %c0_4] : memref<8x8xi32, #tpu.memory_space<vmem>>, vector<8x8xi32>
    %3 = arith.sitofp %2 : vector<8x8xi32> to vector<8x8xf32>
    %4 = tpu.iota {dimensions = array<i32: 1>} : vector<8x64xi32>
    %cst = arith.constant 0.000000e+00 : f32
    %5 = vector.broadcast %cst : f32 to vector<8x64xf32>
    %6 = vector.extract_strided_slice %0 {offsets = [0, 0], sizes = [8, 1], strides = [1, 1]} : vector<8x8xi32> to vector<8x1xi32>
    %7 = vector.broadcast %6 : vector<8x1xi32> to vector<8x64xi32>
    %8 = arith.cmpi eq, %7, %4 : vector<8x64xi32>
    %9 = arith.extui %8 : vector<8x64xi1> to vector<8x64xi32>
    %10 = arith.sitofp %9 : vector<8x64xi32> to vector<8x64xf32>
    %11 = vector.extract_strided_slice %3 {offsets = [0, 0], sizes = [8, 1], strides = [1, 1]} : vector<8x8xf32> to vector<8x1xf32>
    %12 = vector.broadcast %11 : vector<8x1xf32> to vector<8x64xf32>
    %13 = arith.mulf %10, %12 : vector<8x64xf32>
    %14 = arith.addf %5, %13 : vector<8x64xf32>
    %15 = vector.extract_strided_slice %0 {offsets = [0, 1], sizes = [8, 1], strides = [1, 1]} : vector<8x8xi32> to vector<8x1xi32>
    %16 = vector.broadcast %15 : vector<8x1xi32> to vector<8x64xi32>
    %17 = arith.cmpi eq, %16, %4 : vector<8x64xi32>
    %18 = arith.extui %17 : vector<8x64xi1> to vector<8x64xi32>
    %19 = arith.sitofp %18 : vector<8x64xi32> to vector<8x64xf32>
    %20 = vector.extract_strided_slice %3 {offsets = [0, 1], sizes = [8, 1], strides = [1, 1]} : vector<8x8xf32> to vector<8x1xf32>
    %21 = vector.broadcast %20 : vector<8x1xf32> to vector<8x64xf32>
    %22 = arith.mulf %19, %21 : vector<8x64xf32>
    %23 = arith.addf %14, %22 : vector<8x64xf32>
    %24 = vector.extract_strided_slice %0 {offsets = [0, 2], sizes = [8, 1], strides = [1, 1]} : vector<8x8xi32> to vector<8x1xi32>
    %25 = vector.broadcast %24 : vector<8x1xi32> to vector<8x64xi32>
    %26 = arith.cmpi eq, %25, %4 : vector<8x64xi32>
    %27 = arith.extui %26 : vector<8x64xi1> to vector<8x64xi32>
    %28 = arith.sitofp %27 : vector<8x64xi32> to vector<8x64xf32>
    %29 = vector.extract_strided_slice %3 {offsets = [0, 2], sizes = [8, 1], strides = [1, 1]} : vector<8x8xf32> to vector<8x1xf32>
    %30 = vector.broadcast %29 : vector<8x1xf32> to vector<8x64xf32>
    %31 = arith.mulf %28, %30 : vector<8x64xf32>
    %32 = arith.addf %23, %31 : vector<8x64xf32>
    %33 = vector.extract_strided_slice %0 {offsets = [0, 3], sizes = [8, 1], strides = [1, 1]} : vector<8x8xi32> to vector<8x1xi32>
    %34 = vector.broadcast %33 : vector<8x1xi32> to vector<8x64xi32>
    %35 = arith.cmpi eq, %34, %4 : vector<8x64xi32>
    %36 = arith.extui %35 : vector<8x64xi1> to vector<8x64xi32>
    %37 = arith.sitofp %36 : vector<8x64xi32> to vector<8x64xf32>
    %38 = vector.extract_strided_slice %3 {offsets = [0, 3], sizes = [8, 1], strides = [1, 1]} : vector<8x8xf32> to vector<8x1xf32>
    %39 = vector.broadcast %38 : vector<8x1xf32> to vector<8x64xf32>
    %40 = arith.mulf %37, %39 : vector<8x64xf32>
    %41 = arith.addf %32, %40 : vector<8x64xf32>
    %42 = vector.extract_strided_slice %0 {offsets = [0, 4], sizes = [8, 1], strides = [1, 1]} : vector<8x8xi32> to vector<8x1xi32>
    %43 = vector.broadcast %42 : vector<8x1xi32> to vector<8x64xi32>
    %44 = arith.cmpi eq, %43, %4 : vector<8x64xi32>
    %45 = arith.extui %44 : vector<8x64xi1> to vector<8x64xi32>
    %46 = arith.sitofp %45 : vector<8x64xi32> to vector<8x64xf32>
    %47 = vector.extract_strided_slice %3 {offsets = [0, 4], sizes = [8, 1], strides = [1, 1]} : vector<8x8xf32> to vector<8x1xf32>
    %48 = vector.broadcast %47 : vector<8x1xf32> to vector<8x64xf32>
    %49 = arith.mulf %46, %48 : vector<8x64xf32>
    %50 = arith.addf %41, %49 : vector<8x64xf32>
    %51 = vector.extract_strided_slice %0 {offsets = [0, 5], sizes = [8, 1], strides = [1, 1]} : vector<8x8xi32> to vector<8x1xi32>
    %52 = vector.broadcast %51 : vector<8x1xi32> to vector<8x64xi32>
    %53 = arith.cmpi eq, %52, %4 : vector<8x64xi32>
    %54 = arith.extui %53 : vector<8x64xi1> to vector<8x64xi32>
    %55 = arith.sitofp %54 : vector<8x64xi32> to vector<8x64xf32>
    %56 = vector.extract_strided_slice %3 {offsets = [0, 5], sizes = [8, 1], strides = [1, 1]} : vector<8x8xf32> to vector<8x1xf32>
    %57 = vector.broadcast %56 : vector<8x1xf32> to vector<8x64xf32>
    %58 = arith.mulf %55, %57 : vector<8x64xf32>
    %59 = arith.addf %50, %58 : vector<8x64xf32>
    %60 = vector.extract_strided_slice %0 {offsets = [0, 6], sizes = [8, 1], strides = [1, 1]} : vector<8x8xi32> to vector<8x1xi32>
    %61 = vector.broadcast %60 : vector<8x1xi32> to vector<8x64xi32>
    %62 = arith.cmpi eq, %61, %4 : vector<8x64xi32>
    %63 = arith.extui %62 : vector<8x64xi1> to vector<8x64xi32>
    %64 = arith.sitofp %63 : vector<8x64xi32> to vector<8x64xf32>
    %65 = vector.extract_strided_slice %3 {offsets = [0, 6], sizes = [8, 1], strides = [1, 1]} : vector<8x8xf32> to vector<8x1xf32>
    %66 = vector.broadcast %65 : vector<8x1xf32> to vector<8x64xf32>
    %67 = arith.mulf %64, %66 : vector<8x64xf32>
    %68 = arith.addf %59, %67 : vector<8x64xf32>
    %69 = vector.extract_strided_slice %0 {offsets = [0, 7], sizes = [8, 1], strides = [1, 1]} : vector<8x8xi32> to vector<8x1xi32>
    %70 = vector.broadcast %69 : vector<8x1xi32> to vector<8x64xi32>
    %71 = arith.cmpi eq, %70, %4 : vector<8x64xi32>
    %72 = arith.extui %71 : vector<8x64xi1> to vector<8x64xi32>
    %73 = arith.sitofp %72 : vector<8x64xi32> to vector<8x64xf32>
    %74 = vector.extract_strided_slice %3 {offsets = [0, 7], sizes = [8, 1], strides = [1, 1]} : vector<8x8xf32> to vector<8x1xf32>
    %75 = vector.broadcast %74 : vector<8x1xf32> to vector<8x64xf32>
    %76 = arith.mulf %73, %75 : vector<8x64xf32>
    %77 = arith.addf %68, %76 : vector<8x64xf32>
    %78 = tpu.iota {dimensions = array<i32: 1>} : vector<8x2xi32>
    %cst_5 = arith.constant 0.000000e+00 : f32
    %79 = vector.broadcast %cst_5 : f32 to vector<8x2xf32>
    %80 = vector.extract_strided_slice %1 {offsets = [0, 0], sizes = [8, 1], strides = [1, 1]} : vector<8x8xi32> to vector<8x1xi32>
    %81 = vector.broadcast %80 : vector<8x1xi32> to vector<8x2xi32>
    %82 = arith.cmpi eq, %81, %78 : vector<8x2xi32>
    %83 = arith.extui %82 : vector<8x2xi1> to vector<8x2xi32>
    %84 = arith.sitofp %83 : vector<8x2xi32> to vector<8x2xf32>
    %85 = vector.extract_strided_slice %3 {offsets = [0, 0], sizes = [8, 1], strides = [1, 1]} : vector<8x8xf32> to vector<8x1xf32>
    %86 = vector.broadcast %85 : vector<8x1xf32> to vector<8x2xf32>
    %87 = arith.mulf %84, %86 : vector<8x2xf32>
    %88 = arith.addf %79, %87 : vector<8x2xf32>
    %89 = vector.extract_strided_slice %1 {offsets = [0, 1], sizes = [8, 1], strides = [1, 1]} : vector<8x8xi32> to vector<8x1xi32>
    %90 = vector.broadcast %89 : vector<8x1xi32> to vector<8x2xi32>
    %91 = arith.cmpi eq, %90, %78 : vector<8x2xi32>
    %92 = arith.extui %91 : vector<8x2xi1> to vector<8x2xi32>
    %93 = arith.sitofp %92 : vector<8x2xi32> to vector<8x2xf32>
    %94 = vector.extract_strided_slice %3 {offsets = [0, 1], sizes = [8, 1], strides = [1, 1]} : vector<8x8xf32> to vector<8x1xf32>
    %95 = vector.broadcast %94 : vector<8x1xf32> to vector<8x2xf32>
    %96 = arith.mulf %93, %95 : vector<8x2xf32>
    %97 = arith.addf %88, %96 : vector<8x2xf32>
    %98 = vector.extract_strided_slice %1 {offsets = [0, 2], sizes = [8, 1], strides = [1, 1]} : vector<8x8xi32> to vector<8x1xi32>
    %99 = vector.broadcast %98 : vector<8x1xi32> to vector<8x2xi32>
    %100 = arith.cmpi eq, %99, %78 : vector<8x2xi32>
    %101 = arith.extui %100 : vector<8x2xi1> to vector<8x2xi32>
    %102 = arith.sitofp %101 : vector<8x2xi32> to vector<8x2xf32>
    %103 = vector.extract_strided_slice %3 {offsets = [0, 2], sizes = [8, 1], strides = [1, 1]} : vector<8x8xf32> to vector<8x1xf32>
    %104 = vector.broadcast %103 : vector<8x1xf32> to vector<8x2xf32>
    %105 = arith.mulf %102, %104 : vector<8x2xf32>
    %106 = arith.addf %97, %105 : vector<8x2xf32>
    %107 = vector.extract_strided_slice %1 {offsets = [0, 3], sizes = [8, 1], strides = [1, 1]} : vector<8x8xi32> to vector<8x1xi32>
    %108 = vector.broadcast %107 : vector<8x1xi32> to vector<8x2xi32>
    %109 = arith.cmpi eq, %108, %78 : vector<8x2xi32>
    %110 = arith.extui %109 : vector<8x2xi1> to vector<8x2xi32>
    %111 = arith.sitofp %110 : vector<8x2xi32> to vector<8x2xf32>
    %112 = vector.extract_strided_slice %3 {offsets = [0, 3], sizes = [8, 1], strides = [1, 1]} : vector<8x8xf32> to vector<8x1xf32>
    %113 = vector.broadcast %112 : vector<8x1xf32> to vector<8x2xf32>
    %114 = arith.mulf %111, %113 : vector<8x2xf32>
    %115 = arith.addf %106, %114 : vector<8x2xf32>
    %116 = vector.extract_strided_slice %1 {offsets = [0, 4], sizes = [8, 1], strides = [1, 1]} : vector<8x8xi32> to vector<8x1xi32>
    %117 = vector.broadcast %116 : vector<8x1xi32> to vector<8x2xi32>
    %118 = arith.cmpi eq, %117, %78 : vector<8x2xi32>
    %119 = arith.extui %118 : vector<8x2xi1> to vector<8x2xi32>
    %120 = arith.sitofp %119 : vector<8x2xi32> to vector<8x2xf32>
    %121 = vector.extract_strided_slice %3 {offsets = [0, 4], sizes = [8, 1], strides = [1, 1]} : vector<8x8xf32> to vector<8x1xf32>
    %122 = vector.broadcast %121 : vector<8x1xf32> to vector<8x2xf32>
    %123 = arith.mulf %120, %122 : vector<8x2xf32>
    %124 = arith.addf %115, %123 : vector<8x2xf32>
    %125 = vector.extract_strided_slice %1 {offsets = [0, 5], sizes = [8, 1], strides = [1, 1]} : vector<8x8xi32> to vector<8x1xi32>
    %126 = vector.broadcast %125 : vector<8x1xi32> to vector<8x2xi32>
    %127 = arith.cmpi eq, %126, %78 : vector<8x2xi32>
    %128 = arith.extui %127 : vector<8x2xi1> to vector<8x2xi32>
    %129 = arith.sitofp %128 : vector<8x2xi32> to vector<8x2xf32>
    %130 = vector.extract_strided_slice %3 {offsets = [0, 5], sizes = [8, 1], strides = [1, 1]} : vector<8x8xf32> to vector<8x1xf32>
    %131 = vector.broadcast %130 : vector<8x1xf32> to vector<8x2xf32>
    %132 = arith.mulf %129, %131 : vector<8x2xf32>
    %133 = arith.addf %124, %132 : vector<8x2xf32>
    %134 = vector.extract_strided_slice %1 {offsets = [0, 6], sizes = [8, 1], strides = [1, 1]} : vector<8x8xi32> to vector<8x1xi32>
    %135 = vector.broadcast %134 : vector<8x1xi32> to vector<8x2xi32>
    %136 = arith.cmpi eq, %135, %78 : vector<8x2xi32>
    %137 = arith.extui %136 : vector<8x2xi1> to vector<8x2xi32>
    %138 = arith.sitofp %137 : vector<8x2xi32> to vector<8x2xf32>
    %139 = vector.extract_strided_slice %3 {offsets = [0, 6], sizes = [8, 1], strides = [1, 1]} : vector<8x8xf32> to vector<8x1xf32>
    %140 = vector.broadcast %139 : vector<8x1xf32> to vector<8x2xf32>
    %141 = arith.mulf %138, %140 : vector<8x2xf32>
    %142 = arith.addf %133, %141 : vector<8x2xf32>
    %143 = vector.extract_strided_slice %1 {offsets = [0, 7], sizes = [8, 1], strides = [1, 1]} : vector<8x8xi32> to vector<8x1xi32>
    %144 = vector.broadcast %143 : vector<8x1xi32> to vector<8x2xi32>
    %145 = arith.cmpi eq, %144, %78 : vector<8x2xi32>
    %146 = arith.extui %145 : vector<8x2xi1> to vector<8x2xi32>
    %147 = arith.sitofp %146 : vector<8x2xi32> to vector<8x2xf32>
    %148 = vector.extract_strided_slice %3 {offsets = [0, 7], sizes = [8, 1], strides = [1, 1]} : vector<8x8xf32> to vector<8x1xf32>
    %149 = vector.broadcast %148 : vector<8x1xf32> to vector<8x2xf32>
    %150 = arith.mulf %147, %149 : vector<8x2xf32>
    %151 = arith.addf %142, %150 : vector<8x2xf32>
    %cst_6 = arith.constant dense<0.000000e+00> : vector<8xf32>
    %152 = vector.multi_reduction <add>, %3, %cst_6 [1] : vector<8x8xf32> to vector<8xf32>
    %153 = vector.shape_cast %152 : vector<8xf32> to vector<8x1xf32>
    %cst_7 = arith.constant 1.000000e+00 : f32
    %154 = vector.broadcast %cst_7 : f32 to vector<8x1xf32>
    %155 = arith.maximumf %153, %154 : vector<8x1xf32>
    %c0_8 = arith.constant 0 : index
    %c0_9 = arith.constant 0 : index
    %156 = vector.load %arg4[%c0_8, %c0_9] : memref<64x32xf32, #tpu.memory_space<vmem>>, vector<64x32xf32>
    %cst_10 = arith.constant dense<0.000000e+00> : vector<8x32xf32>
    %157 = tpu.matmul %77, %156, %cst_10 {dimension_numbers = #tpu.dot_dimension_numbers<[1], [0], [0], [1], [0, 0, 1, 1], [], []>} : vector<8x64xf32>, vector<64x32xf32>, vector<8x32xf32> -> vector<8x32xf32>
    %c0_11 = arith.constant 0 : index
    %c0_12 = arith.constant 0 : index
    %158 = vector.load %arg5[%c0_11, %c0_12] : memref<2x32xf32, #tpu.memory_space<vmem>>, vector<2x32xf32>
    %cst_13 = arith.constant dense<0.000000e+00> : vector<8x32xf32>
    %159 = tpu.matmul %151, %158, %cst_13 {dimension_numbers = #tpu.dot_dimension_numbers<[1], [0], [0], [1], [0, 0, 1, 1], [], []>} : vector<8x2xf32>, vector<2x32xf32>, vector<8x32xf32> -> vector<8x32xf32>
    %160 = arith.addf %157, %159 : vector<8x32xf32>
    %161 = vector.broadcast %155 : vector<8x1xf32> to vector<8x32xf32>
    %162 = arith.divf %160, %161 : vector<8x32xf32>
    %c0_14 = arith.constant 0 : index
    %c0_15 = arith.constant 0 : index
    %163 = vector.load %arg6[%c0_14, %c0_15] : memref<32x32xf32, #tpu.memory_space<vmem>>, vector<32x32xf32>
    %cst_16 = arith.constant dense<0.000000e+00> : vector<8x32xf32>
    %164 = tpu.matmul %162, %163, %cst_16 {dimension_numbers = #tpu.dot_dimension_numbers<[1], [0], [0], [1], [0, 0, 1, 1], [], []>} : vector<8x32xf32>, vector<32x32xf32>, vector<8x32xf32> -> vector<8x32xf32>
    %c0_17 = arith.constant 0 : index
    %c0_18 = arith.constant 0 : index
    %165 = vector.load %arg7[%c0_17, %c0_18] : memref<1x32xf32, #tpu.memory_space<vmem>>, vector<1x32xf32>
    %166 = vector.broadcast %165 : vector<1x32xf32> to vector<8x32xf32>
    %167 = arith.addf %164, %166 : vector<8x32xf32>
    %168 = math.tanh %167 : vector<8x32xf32>
    %c0_19 = arith.constant 0 : index
    %c0_20 = arith.constant 0 : index
    %169 = vector.load %arg11[%c0_19, %c0_20] : memref<8x32xf32, #tpu.memory_space<vmem>>, vector<8x32xf32>
    tpu.vector_store %arg11[%c0_19, %c0_20], %168 {strides = array<i32>} : memref<8x32xf32, #tpu.memory_space<vmem>>, vector<8x32xf32>,
    %c0_21 = arith.constant 0 : index
    %c0_22 = arith.constant 0 : index
    %170 = vector.load %arg8[%c0_21, %c0_22] : memref<32x128xf32, #tpu.memory_space<vmem>>, vector<32x128xf32>
    %cst_23 = arith.constant dense<0.000000e+00> : vector<8x128xf32>
    %171 = tpu.matmul %168, %170, %cst_23 {dimension_numbers = #tpu.dot_dimension_numbers<[1], [0], [0], [1], [0, 0, 1, 1], [], []>} : vector<8x32xf32>, vector<32x128xf32>, vector<8x128xf32> -> vector<8x128xf32>
    %c0_24 = arith.constant 0 : index
    %c0_25 = arith.constant 0 : index
    %172 = vector.load %arg9[%c0_24, %c0_25] : memref<1x128xf32, #tpu.memory_space<vmem>>, vector<1x128xf32>
    %173 = vector.broadcast %172 : vector<1x128xf32> to vector<8x128xf32>
    %174 = arith.addf %171, %173 : vector<8x128xf32>
    %c0_26 = arith.constant 0 : index
    %c0_27 = arith.constant 0 : index
    %175 = vector.load %arg10[%c0_26, %c0_27] : memref<8x128xf32, #tpu.memory_space<vmem>>, vector<8x128xf32>
    tpu.vector_store %arg10[%c0_26, %c0_27], %174 {strides = array<i32>} : memref<8x128xf32, #tpu.memory_space<vmem>>, vector<8x128xf32>,
    return
  }
  func.func @transform_0(%arg0: i32) -> (i32, i32) {
    %c0_i32 = arith.constant 0 : i32
    %c0_i32_0 = arith.constant 0 : i32
    return %arg0, %c0_i32 : i32, i32
  }
  func.func @transform_1(%arg0: i32) -> (i32, i32) {
    %c0_i32 = arith.constant 0 : i32
    %c0_i32_0 = arith.constant 0 : i32
    return %arg0, %c0_i32 : i32, i32
  }
  func.func @transform_2(%arg0: i32) -> (i32, i32) {
    %c0_i32 = arith.constant 0 : i32
    %c0_i32_0 = arith.constant 0 : i32
    return %arg0, %c0_i32 : i32, i32
  }
  func.func @transform_3(%arg0: i32) -> (i32, i32) {
    %c0_i32 = arith.constant 0 : i32
    %c0_i32_0 = arith.constant 0 : i32
    %c0_i32_1 = arith.constant 0 : i32
    return %c0_i32, %c0_i32_0 : i32, i32
  }
  func.func @transform_4(%arg0: i32) -> (i32, i32) {
    %c0_i32 = arith.constant 0 : i32
    %c0_i32_0 = arith.constant 0 : i32
    %c0_i32_1 = arith.constant 0 : i32
    return %c0_i32, %c0_i32_0 : i32, i32
  }
  func.func @transform_5(%arg0: i32) -> (i32, i32) {
    %c0_i32 = arith.constant 0 : i32
    %c0_i32_0 = arith.constant 0 : i32
    %c0_i32_1 = arith.constant 0 : i32
    return %c0_i32, %c0_i32_0 : i32, i32
  }
  func.func @transform_6(%arg0: i32) -> (i32, i32) {
    %c0_i32 = arith.constant 0 : i32
    %c0_i32_0 = arith.constant 0 : i32
    %c0_i32_1 = arith.constant 0 : i32
    return %c0_i32, %c0_i32_0 : i32, i32
  }
  func.func @transform_7(%arg0: i32) -> (i32, i32) {
    %c0_i32 = arith.constant 0 : i32
    %c0_i32_0 = arith.constant 0 : i32
    %c0_i32_1 = arith.constant 0 : i32
    return %c0_i32, %c0_i32_0 : i32, i32
  }
  func.func @transform_8(%arg0: i32) -> (i32, i32) {
    %c0_i32 = arith.constant 0 : i32
    %c0_i32_0 = arith.constant 0 : i32
    %c0_i32_1 = arith.constant 0 : i32
    return %c0_i32, %c0_i32_0 : i32, i32
  }
  func.func @transform_9(%arg0: i32) -> (i32, i32) {
    %c0_i32 = arith.constant 0 : i32
    %c0_i32_0 = arith.constant 0 : i32
    return %arg0, %c0_i32 : i32, i32
  }
  func.func @transform_10(%arg0: i32) -> (i32, i32) {
    %c0_i32 = arith.constant 0 : i32
    %c0_i32_0 = arith.constant 0 : i32
    return %arg0, %c0_i32 : i32, i32
  }
}

</mosaic_0001>

<bundles_post_ra>
// kernel: tpu_custom_call.1
= control target key start
LH: loop header
LB: loop body
LE: loop exit
PB: predicated region body
PF: predicated region fallthrough
CT: control target
= control target key end

     0   :  { %16 = vsyncpa [#allocation3], 0  ;;  %v774_v2 = vmov 0   ;;  %s1025_s0 = inlined_call_operand.vmem [shape: s32[8,8], index: 0, kind: input, shape index: {}]   ;;  %s1026_s1 = inlined_call_operand.vmem [shape: s32[8,8], index: 1, kind: input, shape index: {}]   ;;  %s1027_s2 = inlined_call_operand.vmem [shape: s32[8,8], index: 2, kind: input, shape index: {}]   ;;  %s1028_s3 = inlined_call_operand.vmem [shape: f32[64,32], index: 3, kind: input, shape index: {}]   ;;  %s1029_s4 = inlined_call_operand.vmem [shape: f32[2,32], index: 4, kind: input, shape index: {}]   ;;  %s1030_s5 = inlined_call_operand.vmem [shape: f32[32,32], index: 5, kind: input, shape index: {}]   ;;  %s1031_s6 = inlined_call_operand.vmem [shape: f32[1,32], index: 6, kind: input, shape index: {}]   ;;  %s1032_s7 = inlined_call_operand.vmem [shape: f32[32,128], index: 7, kind: input, shape index: {}]   ;;  %s1033_s8 = inlined_call_operand.vmem [shape: f32[1,128], index: 8, kind: input, shape index: {}]   ;;  %s1034_s9 = inlined_call_operand.hbm [shape: f32[8,128], index: 9, kind: output, shape index: {0}]   ;;  %s1035_s10 = inlined_call_operand.hbm [shape: f32[8,32], index: 10, kind: output, shape index: {1}]  }
   0x1   :  { %v37_v0 = vld [vmem:[%s1026_s1] sm:$0xff]  ;;  %700 = vset.pattern.permute.xlu0 %v774_v2  ;;  %702 = vset.pattern.permute.xlu1 %v774_v2 }
   0x2   :  { %v38_v1 = vld [vmem:[%s1027_s2] sm:$0xff] }
   0x3   :  { %v848_v3 = vcvt.s32.f32 %v38_v1 }
   0x4   :  { %17 = vsyncpa [#allocation5], 0  ;;  %140 = vperm.xlu0 %700, %v37_v0   ;;  %v775_v4 = vmov 0.0   ;;  %v776_v5 = vmov 1   ;;  %v777_v6 = vmov 2   ;;  %v778_v7 = vmov 4  }
   0x5   :  { %50 = vperm.xlu1 %702, %v848_v3   ;;  %615 = vmatprep.subr.mxu0 %v775_v4  ;;  %v779_v8 = vmov 3   ;;  %v780_v9 = vmov 5   ;;  %v781_v10 = vmov 7   ;;  %v36_v11 = vld [vmem:[%s1025_s0] sm:$0xff]  ;;  %v782_v12 = vmov 6   ;;  %v372_v17 = vld [vmem:[%s1030_s5 + $0x8] sm:$0xff] }
   0x6   :  { %v216_v13 = vld [vmem:[%s1029_s4] sm:$0x3]  ;;  %vm221_vm0 = vcmask 1041408   ;;  %vm783_vm1 = vmmov 0   ;;  %v784_v14 = vmov 0.0|0.0   ;;  %vm203_vm2 = vcmask 64512  }
   0x7   :  { %616 = vmatpush3.msk.msra.mxu0 %vm221_vm0, %v216_v13  ;;  %617 = vmatprep.mubr.msk.f32.mxu0 %vm783_vm1, %v775_v4  ;;  %v204_v15 = vsel %vm203_vm2, %v848_v3, 0.0  ;;  %v371_v16 = vld [vmem:[%s1030_s5] sm:$0xff]  ;;  %v40_v25 = vlaneseq  ;;  %v209_v57 = vld [vmem:[%s1028_s3 + $0x8] sm:$0xff]  ;;  %vm217_vm11 = vcmask 15360   ;;  %v210_v63 = vld [vmem:[%s1028_s3 + $0x10] sm:$0xff]  ;;  %s785_s25 = smov [#allocation4]  }
   0x8   :  { %701 = vset.pattern.permute.xlu0 %v776_v5  ;;  %647 = vmatprep.mubr.msk.f32.mxu1 %vm783_vm1, %v775_v4  ;;  %v674_v18 = vpack.c.bf16 %v372_v17, %v371_v16  ;;  %v208_v56 = vld [vmem:[%s1028_s3] sm:$0xff]  ;;  %s559_s26 = sshll.u32 %s785_s25, 4  ;;  %s560_s26 = int_to_ptr.vmem [resolvable:$true] %s559_s26 }
   0x9   :  { %703 = vset.pattern.permute.xlu1 %v776_v5  ;;  %148 = vperm.xlu0 %701, %v37_v0   ;;  %v887_v28 = vand.u32 127, %v40_v25  ;;  %v662_v61 = vpack.c.bf16 %v209_v57, %v208_v56  ;;  %s726_s27 = scalar_lea.vmem %s560_s26, 128  ;;  %p731_p1 = scmp.lt.s32.totalorder %s560_s26, %s560_s26 }
   0xa   :  { %62 = vperm.xlu1 %703, %v848_v3   ;;  %661 = vmatprep.subr.bf16.mxu0 %v784_v14  ;;  %p727_p0 = scmp.ne.s32.totalorder %s560_s26, %s726_s27  ;;  %p732_p2 = scmp.lt.s32.totalorder %s726_s27, %s726_s27 }
   0xb   :  { %673 = vmatprep.subr.bf16.mxu1 %v784_v14 }
   0xc   :  { %675 = vmatpush3.bf16.msra.mxu1 %v674_v18  ;;  %p733_p3 = por %p732_p2, %p731_p1 }
   0xd   :  { %705 = vset.pattern.permute.xlu0 %v777_v6  ;;  %676 = vmatprep.subr.bf16.mxu1 %v784_v14 }
   0xe   :  { %704 = vset.pattern.permute.xlu1 %v777_v6  ;;  %74 = vperm.xlu0 %705, %v848_v3   ;;  %p734_p4 = pnand %p733_p3, %p727_p0 }
   0xf   :  { %156 = vperm.xlu1 %704, %v37_v0  }
  0x12   :  { %707 = vset.pattern.permute.xlu0 %v778_v7 }
  0x13   :  { %706 = vset.pattern.permute.xlu1 %v779_v8  ;;  %172 = vperm.xlu0 %707, %v37_v0  }
  0x14   :  { %164 = vperm.xlu1 %706, %v37_v0  }
  0x17   :  { %710 = vset.pattern.permute.xlu0 %v780_v9 }
  0x18   :  { %86 = vperm.xlu1 %706, %v848_v3   ;;  %110 = vperm.xlu0 %710, %v848_v3  }
  0x1c   :  { %708 = vset.pattern.permute.xlu1 %v778_v7  ;;  %712 = vset.pattern.permute.xlu0 %v781_v10 }
  0x1d   :  { %98 = vperm.xlu1 %708, %v848_v3   ;;  %196 = vperm.xlu0 %712, %v37_v0  }
  0x21   :  { %709 = vset.pattern.permute.xlu1 %v780_v9  ;;  %715 = vset.pattern.permute.xlu0 %v776_v5  ;;  %v212_v5 = vld [vmem:[%s1028_s3 + $0x20] sm:$0xff] }
  0x22   :  { %180 = vperm.xlu1 %709, %v37_v0   ;;  %56 = vperm.xlu0 %715, %v36_v11  }
  0x26   :  { %711 = vset.pattern.permute.xlu1 %v782_v12  ;;  %718 = vset.pattern.permute.xlu0 %v778_v7 }
  0x27   :  { %188 = vperm.xlu1 %711, %v37_v0   ;;  %92 = vperm.xlu0 %718, %v36_v11   ;;  %v211_v0 = vld [vmem:[%s1028_s3 + $0x18] sm:$0xff] }
  0x2b   :  { %122 = vperm.xlu1 %711, %v848_v3   ;;  %721 = vset.pattern.permute.xlu0 %v781_v10 }
  0x2c   :  { %128 = vperm.xlu0 %721, %v36_v11  }
  0x2f   :  { %713 = vset.pattern.permute.xlu1 %v781_v10 }
  0x30   :  { %134 = vperm.xlu1 %713, %v848_v3   ;;  %v665_v3 = vpack.c.bf16 %v211_v0, %v210_v63 }
  0x34   :  { %714 = vset.pattern.permute.xlu1 %v774_v2 }
  0x35   :  { %43 = vperm.xlu1 %714, %v36_v11  }
  0x39   :  { %716 = vset.pattern.permute.xlu1 %v777_v6  ;;  %v213_v6 = vld [vmem:[%s1028_s3 + $0x28] sm:$0xff] }
  0x3a   :  { %68 = vperm.xlu1 %716, %v36_v11  }
  0x3e   :  { %717 = vset.pattern.permute.xlu1 %v779_v8 }
  0x3f   :  { %80 = vperm.xlu1 %717, %v36_v11  }
  0x43   :  { %719 = vset.pattern.permute.xlu1 %v780_v9  ;;  %v668_v9 = vpack.c.bf16 %v213_v6, %v212_v5 }
  0x44   :  { %104 = vperm.xlu1 %719, %v36_v11  }
  0x48   :  { %720 = vset.pattern.permute.xlu1 %v782_v12  ;;  %v215_v12 = vld [vmem:[%s1028_s3 + $0x38] sm:$0xff] }
  0x49   :  { %116 = vperm.xlu1 %720, %v36_v11   ;;  %v214_v11 = vld [vmem:[%s1028_s3 + $0x30] sm:$0xff] }
  0x6d   :  { %205 = vadd.xlane.f32.xlu1 %v204_v15 }
  0x83   :  { %v141_v21 = vpop.permute.xlu0 %140 }
  0x84   :  { %v879_v19 = vpop.permute.xlu1 %50  ;;  %vm142_vm4 = vcmp.eq.s32.totalorder %v141_v21, %v887_v28  ;;  %v671_v21 = vpack.c.bf16 %v215_v12, %v214_v11 }
  0x85   :  { %v579_v32 = vsel %vm142_vm4, 1.0, %v775_v4 }
  0x86   :  { %v145_v37 = vmul.f32 %v579_v32, %v879_v19 }
  0x88   :  { %v149_v23 = vpop.permute.xlu0 %148 }
  0x89   :  { %v881_v20 = vpop.permute.xlu1 %62  ;;  %vm150_vm3 = vcmp.eq.s32.totalorder %v149_v23, %v887_v28 }
  0x8a   :  { %v580_v31 = vsel %vm150_vm3, 1.0, %v775_v4 }
  0x8b   :  { %v153_v35 = vmul.f32 %v580_v31, %v881_v20 }
  0x8d   :  { %v883_v26 = vpop.permute.xlu0 %74  ;;  %v154_v41 = vadd.f32 %v153_v35, %v145_v37 }
  0x8e   :  { %v157_v22 = vpop.permute.xlu1 %156 }
  0x8f   :  { %vm158_vm5 = vcmp.eq.s32.totalorder %v157_v22, %v887_v28 }
  0x90   :  { %v581_v33 = vsel %vm158_vm5, 1.0, %v775_v4  ;;  %vm295_vm5 = vcmask 523264  }
  0x91   :  { %v161_v38 = vmul.f32 %v581_v33, %v883_v26 }
  0x92   :  { %v173_v30 = vpop.permute.xlu0 %172 }
  0x93   :  { %v165_v24 = vpop.permute.xlu1 %164  ;;  %vm174_vm7 = vcmp.eq.s32.totalorder %v173_v30, %v887_v28  ;;  %v162_v45 = vadd.f32 %v161_v38, %v154_v41 }
  0x94   :  { %vm166_vm6 = vcmp.eq.s32.totalorder %v165_v24, %v887_v28  ;;  %v583_v40 = vsel %vm174_vm7, 1.0, %v775_v4 }
  0x95   :  { %v582_v39 = vsel %vm166_vm6, 1.0, %v775_v4  ;;  %vm382_vm6 = vcmask 261120  }
  0x97   :  { %v885_v27 = vpop.permute.xlu1 %86  ;;  %v900_v36 = vpop.permute.xlu0 %110 }
  0x98   :  { %v169_v42 = vmul.f32 %v582_v39, %v885_v27 }
  0x9a   :  { %v170_v48 = vadd.f32 %v169_v42, %v162_v45 }
  0x9c   :  { %v890_v29 = vpop.permute.xlu1 %98  ;;  %v197_v47 = vpop.permute.xlu0 %196 }
  0x9d   :  { %v177_v46 = vmul.f32 %v583_v40, %v890_v29  ;;  %vm198_vm10 = vcmp.eq.s32.totalorder %v197_v47, %v887_v28 }
  0x9e   :  { %v586_v54 = vsel %vm198_vm10, 1.0, %v775_v4 }
  0x9f   :  { %v178_v52 = vadd.f32 %v177_v46, %v170_v48 }
  0xa1   :  { %v181_v34 = vpop.permute.xlu1 %180  ;;  %v57_v1 = vpop.permute.xlu0 %56 }
  0xa2   :  { %vm182_vm8 = vcmp.eq.s32.totalorder %v181_v34, %v887_v28  ;;  %vm58_vm13 = vcmp.eq.s32.totalorder %v57_v1, %v887_v28 }
  0xa3   :  { %v584_v44 = vsel %vm182_vm8, 1.0, %v775_v4  ;;  %v572_v10 = vsel %vm58_vm13, 1.0, %v775_v4 }
  0xa4   :  { %v185_v49 = vmul.f32 %v584_v44, %v900_v36  ;;  %v65_v17 = vmul.f32 %v572_v10, %v881_v20 }
  0xa6   :  { %v189_v43 = vpop.permute.xlu1 %188  ;;  %v186_v55 = vadd.f32 %v185_v49, %v178_v52  ;;  %v93_v16 = vpop.permute.xlu0 %92 }
  0xa7   :  { %vm190_vm9 = vcmp.eq.s32.totalorder %v189_v43, %v887_v28  ;;  %vm94_vm15 = vcmp.eq.s32.totalorder %v93_v16, %v887_v28  ;;  %v373_v43 = vld [vmem:[%s1030_s5 + $0x10] sm:$0xff] }
  0xa8   :  { %v585_v51 = vsel %vm190_vm9, 1.0, %v775_v4  ;;  %v575_v20 = vsel %vm94_vm15, 1.0, %v775_v4 }
  0xa9   :  { %v101_v32 = vmul.f32 %v575_v20, %v890_v29 }
  0xaa   :  { %v913_v50 = vpop.permute.xlu1 %122 }
  0xab   :  { %v193_v53 = vmul.f32 %v585_v51, %v913_v50  ;;  %v129_v31 = vpop.permute.xlu0 %128  ;;  %v459_v51 = vld [vmem:[%s1032_s7 + $0x8] sm:$0xff] }
  0xac   :  { %vm130_vm3 = vcmp.eq.s32.totalorder %v129_v31, %v887_v28 }
  0xad   :  { %v194_v59 = vadd.f32 %v193_v53, %v186_v55  ;;  %v460_v53 = vld [vmem:[%s1032_s7 + $0x10] sm:$0xff]  ;;  %v590_v55 = vld [vmem:[%s1031_s6] ss:$0 sm:$0xff] }
  0xaf   :  { %v135_v58 = vpop.permute.xlu1 %134 }
  0xb0   :  { %v201_v60 = vmul.f32 %v586_v54, %v135_v58 }
  0xb2   :  { %v202_v62 = vadd.f32 %v201_v60, %v194_v59 }
  0xb4   :  { %618 = vmatmul.mubr.msk.f32.vlgmr.msra.gmra.mrb[0].mxu0 %vm217_vm11, %v202_v62  ;;  %v44_v2 = vpop.permute.xlu1 %43 }
  0xb5   :  { %vm45_vm12 = vcmp.eq.s32.totalorder %v44_v2, %v887_v28  ;;  %663 = vmatpush3.bf16.msra.mxu0 %v662_v61  ;;  %636 = vmatprep.mubr.msk.f32.mxu0 %vm783_vm1, %v775_v4 }
  0xb6   :  { %664 = vmatprep.subr.bf16.mxu0 %v784_v14  ;;  %v571_v7 = vsel %vm45_vm12, 1.0, %v775_v4 }
  0xb7   :  { %v53_v13 = vmul.f32 %v571_v7, %v879_v19 }
  0xb9   :  { %v69_v8 = vpop.permute.xlu1 %68  ;;  %666 = vmatpush3.bf16.msra.mxu0 %v665_v3  ;;  %v66_v23 = vadd.f32 %v65_v17, %v53_v13 }
  0xba   :  { %vm70_vm14 = vcmp.eq.s32.totalorder %v69_v8, %v887_v28  ;;  %667 = vmatprep.subr.bf16.mxu0 %v784_v14 }
  0xbb   :  { %v573_v15 = vsel %vm70_vm14, 1.0, %v775_v4 }
  0xbc   :  { %v77_v18 = vmul.f32 %v573_v15, %v883_v26 }
  0xbd   :  { %669 = vmatpush3.bf16.msra.mxu0 %v668_v9 }
  0xbe   :  { %v81_v22 = vpop.permute.xlu1 %80  ;;  %670 = vmatprep.subr.bf16.mxu0 %v784_v14  ;;  %v78_v19 = vadd.f32 %v77_v18, %v66_v23 }
  0xbf   :  { %vm82_vm0 = vcmp.eq.s32.totalorder %v81_v22, %v887_v28 }
  0xc0   :  { %v574_v24 = vsel %vm82_vm0, 1.0, %v775_v4 }
  0xc1   :  { %v89_v25 = vmul.f32 %v574_v24, %v885_v27  ;;  %672 = vmatpush3.bf16.msra.mxu0 %v671_v21  ;;  %v578_v27 = vsel %vm130_vm3, 1.0, %v775_v4 }
  0xc2   :  { %v137_v41 = vmul.f32 %v578_v27, %v135_v58 }
  0xc3   :  { %v90_v30 = vadd.f32 %v89_v25, %v78_v19  ;;  %v105_v26 = vpop.permute.xlu1 %104 }
  0xc4   :  { %vm106_vm2 = vcmp.eq.s32.totalorder %v105_v26, %v887_v28 }
  0xc5   :  { %v576_v33 = vsel %vm106_vm2, 1.0, %v775_v4  ;;  %v102_v34 = vadd.f32 %v101_v32, %v90_v30 }
  0xc6   :  { %v113_v35 = vmul.f32 %v576_v33, %v900_v36 }
  0xc8   :  { %v117_v37 = vpop.permute.xlu1 %116  ;;  %v114_v39 = vadd.f32 %v113_v35, %v102_v34 }
  0xc9   :  { %vm118_vm4 = vcmp.eq.s32.totalorder %v117_v37, %v887_v28  ;;  %v374_v28 = vld [vmem:[%s1030_s5 + $0x18] sm:$0xff] }
  0xca   :  { %v577_v38 = vsel %vm118_vm4, 1.0, %v775_v4  ;;  %v677_v36 = vpack.c.bf16 %v374_v28, %v373_v43 }
  0xcb   :  { %v125_v40 = vmul.f32 %v577_v38, %v913_v50  ;;  %v458_v50 = vld [vmem:[%s1032_s7] sm:$0xff] }
  0xcc   :  { %678 = vmatpush3.bf16.msra.mxu1 %v677_v36  ;;  %v680_v52 = vpack.c.bf16 %v459_v51, %v458_v50 }
  0xcd   :  { %v126_v42 = vadd.f32 %v125_v40, %v114_v39  ;;  %679 = vmatprep.subr.bf16.mxu1 %v784_v14 }
  0xcf   :  { %v138_v29 = vadd.f32 %v137_v41, %v126_v42 }
  0xd1   :  { %637 = vmatmul.mubr.msk.f32.vlgmr.msra.gmra.mrb[0].mxu0 %vm295_vm5, %v138_v29 }
  0xfa   :  { %v206_v44 = vpop.xlane.xlu1 %205 }
  0xfb   :  { %v207_v45 = vmax.f32 %v206_v44, 1.0 }
  0xfd   :  { %722 = vrcp.f32 %v207_v45 }
 0x107   :  { %v723_v46 = vpop.eup %722 }
 0x1a4   :  { %v365_v47 = vpop.f32.mrb[0].mxu0 }
 0x1a5   :  { %v370_v48 = vmul.f32 %v723_v46, %v365_v47  ;;  %v638_v49 = vpop.f32.mrb[1].mxu0 }
 0x1a7   :  { %648 = vmatmul.mubr.msk.f32.vlgmr.msra.gmra.mrb[0].mxu1 %vm382_vm6, %v370_v48 }
 0x1a8   :  { %658 = vmatprep.mubr.msk.f32.mxu1 %vm783_vm1, %v775_v4  ;;  %681 = vmatpush3.bf16.msra.mxu1 %v680_v52  ;;  %v461_v4 = vld [vmem:[%s1032_s7 + $0x18] sm:$0xff] }
 0x1a9   :  { %682 = vmatprep.subr.bf16.mxu1 %v784_v14  ;;  %v683_v54 = vpack.c.bf16 %v461_v4, %v460_v53 }
 0x1ac   :  { %684 = vmatpush3.bf16.msra.mxu1 %v683_v54 }
 0x27a   :  { %v452_v56 = vpop.f32.mrb[0].mxu1 }
 0x27b   :  { %v453_v57 = vadd.f32 %v590_v55, %v452_v56  ;;  %v649_v58 = vpop.f32.mrb[1].mxu1 }
 0x27d   :  { %724 = vtanh.f32 %v453_v57 }
 0x287   :  { %v725_v59 = vpop.eup %724 }
 0x288   :  { %457 = vst.msk [vmem:[#allocation4] sm:$0xff] %vm382_vm6, %v725_v59  ;;  %659 = vmatmul.mubr.msk.f32.vlgmr.msra.gmra.mrb[2].mxu1 %vm382_vm6, %v725_v59 }
 0x289   :  { %737 = shalt.err (!%p734_p4)
}
 0x28a   :  { %s738_s28 = scalar_lea.hbm %s1035_s10, 128 }
 0x28b   :  { %p739_p5 = scmp.ne.s32.totalorder %s1035_s10, %s738_s28  ;;  %p742_p6 = scmp.lt.u32.totalorder %s738_s28, %s1035_s10 }
 0x28d   :  { %p744_p7 = pnand %p742_p6, %p739_p5 }
 0x28f   :  { %747 = shalt.err (!%p744_p7)
}
 0x290   :  { %562 = dma.vmem_to_hbm [thread:$0]  %s560_s26, 128, %s1035_s10, [#allocation5]   ;;  %v592_v14 = vld [vmem:[%s1033_s8] ss:$0 sm:$0xff] }
 0x291   :  { %s786_s3 = smov [#allocation2]  }
 0x292   :  { %s549_s1 = sshll.u32 %s786_s3, 4  ;;  %s550_s1 = int_to_ptr.vmem [resolvable:$true] %s549_s1 }
 0x293   :  { %s748_s2 = scalar_lea.vmem %s550_s1, 128  ;;  %p753_p9 = scmp.lt.s32.totalorder %s550_s1, %s550_s1 }
 0x294   :  { %p749_p8 = scmp.ne.s32.totalorder %s550_s1, %s748_s2  ;;  %p754_p10 = scmp.lt.s32.totalorder %s748_s2, %s748_s2 }
 0x296   :  { %p755_p11 = por %p754_p10, %p753_p9 }
 0x298   :  { %p756_p12 = pnand %p755_p11, %p749_p8 }
 0x35b   :  { %v538_v60 = vpop.f32.mrb[2].mxu1 }
 0x35c   :  { %v539_v61 = vadd.f32 %v592_v14, %v538_v60  ;;  %v660_v62 = vpop.f32.mrb[3].mxu1 }
 0x35e   :  { %542 = vst [vmem:[#allocation2] sm:$0xff] %v539_v61 }
 0x35f   :  { %759 = shalt.err (!%p756_p12)
}
 0x360   :  { %s760_s18 = scalar_lea.hbm %s1034_s9, 128 }
 0x361   :  { %p761_p13 = scmp.ne.s32.totalorder %s1034_s9, %s760_s18  ;;  %p764_p0 = scmp.lt.u32.totalorder %s760_s18, %s1034_s9 }
 0x363   :  { %p766_p1 = pnand %p764_p0, %p761_p13 }
 0x365   :  { %769 = shalt.err (!%p766_p1)
}
 0x366   :  { %552 = dma.vmem_to_hbm [thread:$0]  %s550_s1, 128, %s1034_s9, [#allocation3]  }
 0x367   :  { %770 = dma.done.wait [#allocation3], 128  }
 0x368   :  { %771 = vsyncadd [#allocation3], 4294967168 }
 0x369   :  { %772 = dma.done.wait [#allocation5], 128  }
 0x36a   :  { %773 = vsyncadd [#allocation5], 4294967168 }
 0x36b   :  { %569 = vsyncpa [#allocation3], 1 }
 0x36c   :  { %570 = vsyncpa [#allocation5], 1 }

</bundles_post_ra>
